<compile_context>
chip_gen: v7x
topology: tpu7x:2x2x1
jax: 0.10.0
libtpu: 0.0.40
codegen_flags: <defaults>
</compile_context>

<pallas_src>
import jax
import jax.numpy as jnp
from jax.experimental import pallas as pl
from jax.experimental.pallas import tpu as pltpu

ACTION_DIM = 2
STATE_DIM = 14
HIDDEN_DIM = 256
IN_DIM = STATE_DIM + ACTION_DIM  # 16

LANE = 128            # batch lives on the lane axis -> tile granularity is 128
DEFAULT_BLOCK_B = 1024  # per-step batch tile; past ~1-2K the MXU slot saturates


def _round_up(x, m):
    return ((x + m - 1) // m) * m


def _critic_kernel(x_ref, w1_ref, b1_ref, w2_ref, b2_ref, w3_ref, b3_ref, o_ref):
    """Feature-major MLP: batch on lanes, features on sublanes.

    x:  (16, TB)   bf16   rows 0..13 = state, rows 14..15 = action
    w1: (256, 16)  bf16   PyTorch (out, in) layout, used directly as LHS
    b1: (256, 1)   f32
    w2: (256, 256) bf16
    b2: (256, 1)   f32
    w3: (256, 1)   f32    final layer as a column (reduced on VPU/XLU)
    b3: (1,)       f32    SMEM scalar
    o:  (1, TB)    f32    lane-dense output row
    """
    x = x_ref[...]

    h1 = jnp.dot(w1_ref[...], x, preferred_element_type=jnp.float32) + b1_ref[...]
    h1 = jnp.maximum(h1, 0.0)

    h2 = jnp.dot(w2_ref[...], h1.astype(jnp.bfloat16),
                 preferred_element_type=jnp.float32) + b2_ref[...]
    h2 = jnp.maximum(h2, 0.0)

    # Final Linear(256 -> 1): elementwise multiply (VPU) + sublane reduction
    # (XLU) instead of a 1-wide MXU matmul; result is already lane-dense.
    q = jnp.sum(h2 * w3_ref[...], axis=0, keepdims=True) + b3_ref[0]   # (1, TB)
    o_ref[...] = q.astype(o_ref.dtype)


def _select_tiles(batch, block_b):
    """Balanced batch tiles: >=2 grid steps when there is enough work (so both
    v7x TensorCores are fed), tile a multiple of 128 lanes, total padding < 1
    tile (no 2x over-padding for awkward batch sizes)."""
    n = max(1, -(-batch // block_b))
    if n == 1 and batch > LANE:
        n = 2
    tb = _round_up(-(-batch // n), LANE)
    return n, tb


def critic_forward(state, action, params, *, block_b=DEFAULT_BLOCK_B):
    """state: (B, 14), action: (B, 2) -> q: (B, 1) float32."""
    w1, b1, w2, b2, w3, b3 = params
    B = state.shape[0]

    n, tb = _select_tiles(B, block_b)
    b_pad = n * tb

    # One wrapper-side concat + pad + transpose (layout plumbing, not compute):
    # the kernel consumes a lane-dense bf16 (16, B_pad) slab.
    x = jnp.concatenate([state, action], axis=-1).astype(jnp.float32)
    x = jnp.pad(x, ((0, b_pad - B), (0, 0)))
    xT = x.astype(jnp.bfloat16).T                                   # (16, B_pad)

    def const_spec(shape):
        # Same block every grid step -> weights stay VMEM-resident.
        return pl.BlockSpec(shape, lambda i: (0, 0))

    cost = pl.CostEstimate(
        flops=2 * b_pad * (IN_DIM * HIDDEN_DIM + HIDDEN_DIM * HIDDEN_DIM + HIDDEN_DIM),
        transcendentals=0,
        bytes_accessed=int(xT.size * 2 + b_pad * 4
                           + (w1.size + w2.size) * 2
                           + (b1.size + b2.size + w3.size + b3.size) * 4),
    )

    out = pl.pallas_call(
        _critic_kernel,
        out_shape=jax.ShapeDtypeStruct((1, b_pad), jnp.float32),
        grid=(n,),
        in_specs=[
            pl.BlockSpec((IN_DIM, tb), lambda i: (0, i)),           # x^T batch block
            const_spec((HIDDEN_DIM, IN_DIM)),                       # W1 (256,16)
            const_spec((HIDDEN_DIM, 1)),                            # b1
            const_spec((HIDDEN_DIM, HIDDEN_DIM)),                   # W2 (256,256)
            const_spec((HIDDEN_DIM, 1)),                            # b2
            const_spec((HIDDEN_DIM, 1)),                            # W3 column
            pl.BlockSpec(memory_space=pltpu.MemorySpace.SMEM),      # b3 scalar
        ],
        out_specs=pl.BlockSpec((1, tb), lambda i: (0, i)),          # lane-dense out
        compiler_params=pltpu.CompilerParams(
            dimension_semantics=("parallel",)),
        cost_estimate=cost,
    )(xT, w1, b1, w2, b2, w3, b3)

    return out[0, :B].reshape(B, 1)


def init_params(key):
    """Deterministic init matching PyTorch Linear, pre-laid-out for the kernel.

    Weights keep PyTorch's native (out, in) layout (used directly as the LHS of
    the feature-major matmuls).  W1/W2 are bf16; biases and the 256->1 column
    stay f32.
    """
    k1, k2, k3, k4, k5, k6 = jax.random.split(key, 6)

    def linear(kw, kb, fan_in, fan_out):
        bound = 1.0 / jnp.sqrt(fan_in)
        w = jax.random.uniform(kw, (fan_out, fan_in), jnp.float32, -bound, bound)
        b = jax.random.uniform(kb, (fan_out,), jnp.float32, -bound, bound)
        return w, b

    w1, b1 = linear(k1, k2, IN_DIM, HIDDEN_DIM)
    w2, b2 = linear(k3, k4, HIDDEN_DIM, HIDDEN_DIM)
    w3, b3 = linear(k5, k6, HIDDEN_DIM, 1)

    return (
        w1.astype(jnp.bfloat16),            # (256, 16)
        b1.reshape(HIDDEN_DIM, 1),          # (256, 1) f32
        w2.astype(jnp.bfloat16),            # (256, 256)
        b2.reshape(HIDDEN_DIM, 1),          # (256, 1) f32
        w3.reshape(HIDDEN_DIM, 1),          # (256, 1) f32 column
        b3.reshape(1),                      # (1,) f32
    )


def reference_forward(state, action, params):
    """Pure-JAX f32 reference using the same (bf16-rounded) weights."""
    w1, b1, w2, b2, w3, b3 = params
    x = jnp.concatenate([state, action], axis=-1).astype(jnp.float32)
    h1 = jnp.maximum(x @ w1.astype(jnp.float32).T + b1[:, 0], 0.0)
    h2 = jnp.maximum(h1 @ w2.astype(jnp.float32).T + b2[:, 0], 0.0)
    return h2 @ w3 + b3


if __name__ == "__main__":
    key = jax.random.PRNGKey(0)
    kp, ks, ka = jax.random.split(key, 3)

    B = 8
    params = init_params(kp)
    state = jax.random.normal(ks, (B, STATE_DIM), jnp.float32)
    action = jax.random.normal(ka, (B, ACTION_DIM), jnp.float32)

    q = critic_forward(state, action, params)
    q = jax.block_until_ready(q)

    q_ref = reference_forward(state, action, params)
    assert q.shape == (B, 1)
    # bf16 inputs/weights on the MXU path vs an f32 reference: expected error
    # is ~1e-3 relative; use a tolerance with margin.
    assert jnp.allclose(q, q_ref, atol=2e-2, rtol=2e-2), (q, q_ref)

    print("KERNEL_OK")
</pallas_src>

<mosaic_0001>
module attributes {stable_mosaic.version = 11 : i64} {
  func.func @_critic_kernel(%arg0: i32, %arg1: memref<16x128xbf16, #tpu.memory_space<vmem>>, %arg2: memref<256x16xbf16, #tpu.memory_space<vmem>>, %arg3: memref<256x1xf32, #tpu.memory_space<vmem>>, %arg4: memref<256x256xbf16, #tpu.memory_space<vmem>>, %arg5: memref<256x1xf32, #tpu.memory_space<vmem>>, %arg6: memref<256x1xf32, #tpu.memory_space<vmem>>, %arg7: memref<1xf32, #tpu.memory_space<smem>>, %arg8: memref<1x128xf32, #tpu.memory_space<vmem>>) attributes {dimension_semantics = [#tpu.dimension_semantics<parallel>], iteration_bounds = array<i64: 1>, scalar_prefetch = 0 : i64, scratch_operands = 0 : i64, tpu.core_type = #tpu.core_type<tc>, window_params = [{transform_indices = @transform_0, window_bounds = array<i64: 16, 128>}, {pipeline_mode = #tpu.pipeline_mode<synchronous>, transform_indices = @transform_1, window_bounds = array<i64: 256, 16>}, {pipeline_mode = #tpu.pipeline_mode<synchronous>, transform_indices = @transform_2, window_bounds = array<i64: 256, 1>}, {pipeline_mode = #tpu.pipeline_mode<synchronous>, transform_indices = @transform_3, window_bounds = array<i64: 256, 256>}, {pipeline_mode = #tpu.pipeline_mode<synchronous>, transform_indices = @transform_4, window_bounds = array<i64: 256, 1>}, {pipeline_mode = #tpu.pipeline_mode<synchronous>, transform_indices = @transform_5, window_bounds = array<i64: 256, 1>}, {transform_indices = @transform_6, window_bounds = array<i64: 1>}, {transform_indices = @transform_7, window_bounds = array<i64: 1, 128>}]} {
    %c0 = arith.constant 0 : index
    %c0_0 = arith.constant 0 : index
    %0 = vector.load %arg1[%c0, %c0_0] : memref<16x128xbf16, #tpu.memory_space<vmem>>, vector<16x128xbf16>
    %c0_1 = arith.constant 0 : index
    %c0_2 = arith.constant 0 : index
    %1 = vector.load %arg2[%c0_1, %c0_2] : memref<256x16xbf16, #tpu.memory_space<vmem>>, vector<256x16xbf16>
    %cst = arith.constant dense<0.000000e+00> : vector<256x128xf32>
    %2 = tpu.matmul %1, %0, %cst {dimension_numbers = #tpu.dot_dimension_numbers<[1], [0], [0], [1], [0, 0, 1, 1], [], []>} : vector<256x16xbf16>, vector<16x128xbf16>, vector<256x128xf32> -> vector<256x128xf32>
    %c0_3 = arith.constant 0 : index
    %c0_4 = arith.constant 0 : index
    %3 = vector.load %arg3[%c0_3, %c0_4] : memref<256x1xf32, #tpu.memory_space<vmem>>, vector<256x1xf32>
    %4 = vector.broadcast %3 : vector<256x1xf32> to vector<256x128xf32>
    %5 = arith.addf %2, %4 : vector<256x128xf32>
    %cst_5 = arith.constant 0.000000e+00 : f32
    %6 = vector.broadcast %cst_5 : f32 to vector<256x128xf32>
    %7 = arith.maximumf %5, %6 : vector<256x128xf32>
    %c0_6 = arith.constant 0 : index
    %c0_7 = arith.constant 0 : index
    %8 = vector.load %arg4[%c0_6, %c0_7] : memref<256x256xbf16, #tpu.memory_space<vmem>>, vector<256x256xbf16>
    %9 = arith.truncf %7 : vector<256x128xf32> to vector<256x128xbf16>
    %cst_8 = arith.constant dense<0.000000e+00> : vector<256x128xf32>
    %10 = tpu.matmul %8, %9, %cst_8 {dimension_numbers = #tpu.dot_dimension_numbers<[1], [0], [0], [1], [0, 0, 1, 1], [], []>} : vector<256x256xbf16>, vector<256x128xbf16>, vector<256x128xf32> -> vector<256x128xf32>
    %c0_9 = arith.constant 0 : index
    %c0_10 = arith.constant 0 : index
    %11 = vector.load %arg5[%c0_9, %c0_10] : memref<256x1xf32, #tpu.memory_space<vmem>>, vector<256x1xf32>
    %12 = vector.broadcast %11 : vector<256x1xf32> to vector<256x128xf32>
    %13 = arith.addf %10, %12 : vector<256x128xf32>
    %cst_11 = arith.constant 0.000000e+00 : f32
    %14 = vector.broadcast %cst_11 : f32 to vector<256x128xf32>
    %15 = arith.maximumf %13, %14 : vector<256x128xf32>
    %c0_12 = arith.constant 0 : index
    %c0_13 = arith.constant 0 : index
    %16 = vector.load %arg6[%c0_12, %c0_13] : memref<256x1xf32, #tpu.memory_space<vmem>>, vector<256x1xf32>
    %17 = vector.broadcast %16 : vector<256x1xf32> to vector<256x128xf32>
    %18 = arith.mulf %15, %17 : vector<256x128xf32>
    %cst_14 = arith.constant dense<0.000000e+00> : vector<128xf32>
    %19 = vector.multi_reduction <add>, %18, %cst_14 [0] : vector<256x128xf32> to vector<128xf32>
    %20 = vector.shape_cast %19 : vector<128xf32> to vector<1x128xf32>
    %c0_15 = arith.constant 0 : index
    %21 = memref.load %arg7[%c0_15] : memref<1xf32, #tpu.memory_space<smem>>
    %22 = vector.broadcast %21 : f32 to vector<1x128xf32>
    %23 = arith.addf %20, %22 : vector<1x128xf32>
    %c0_16 = arith.constant 0 : index
    %c0_17 = arith.constant 0 : index
    %24 = vector.load %arg8[%c0_16, %c0_17] : memref<1x128xf32, #tpu.memory_space<vmem>>, vector<1x128xf32>
    tpu.vector_store %arg8[%c0_16, %c0_17], %23 {strides = array<i32>} : memref<1x128xf32, #tpu.memory_space<vmem>>, vector<1x128xf32>,
    return
  }
  func.func @transform_0(%arg0: i32) -> (i32, i32) {
    %c0_i32 = arith.constant 0 : i32
    %c0_i32_0 = arith.constant 0 : i32
    return %c0_i32, %arg0 : i32, i32
  }
  func.func @transform_1(%arg0: i32) -> (i32, i32) {
    %c0_i32 = arith.constant 0 : i32
    %c0_i32_0 = arith.constant 0 : i32
    %c0_i32_1 = arith.constant 0 : i32
    return %c0_i32, %c0_i32_0 : i32, i32
  }
  func.func @transform_2(%arg0: i32) -> (i32, i32) {
    %c0_i32 = arith.constant 0 : i32
    %c0_i32_0 = arith.constant 0 : i32
    %c0_i32_1 = arith.constant 0 : i32
    return %c0_i32, %c0_i32_0 : i32, i32
  }
  func.func @transform_3(%arg0: i32) -> (i32, i32) {
    %c0_i32 = arith.constant 0 : i32
    %c0_i32_0 = arith.constant 0 : i32
    %c0_i32_1 = arith.constant 0 : i32
    return %c0_i32, %c0_i32_0 : i32, i32
  }
  func.func @transform_4(%arg0: i32) -> (i32, i32) {
    %c0_i32 = arith.constant 0 : i32
    %c0_i32_0 = arith.constant 0 : i32
    %c0_i32_1 = arith.constant 0 : i32
    return %c0_i32, %c0_i32_0 : i32, i32
  }
  func.func @transform_5(%arg0: i32) -> (i32, i32) {
    %c0_i32 = arith.constant 0 : i32
    %c0_i32_0 = arith.constant 0 : i32
    %c0_i32_1 = arith.constant 0 : i32
    return %c0_i32, %c0_i32_0 : i32, i32
  }
  func.func @transform_6(%arg0: i32) -> i32 {
    %c0_i32 = arith.constant 0 : i32
    %c0_i32_0 = arith.constant 0 : i32
    return %c0_i32 : i32
  }
  func.func @transform_7(%arg0: i32) -> (i32, i32) {
    %c0_i32 = arith.constant 0 : i32
    %c0_i32_0 = arith.constant 0 : i32
    return %c0_i32, %arg0 : i32, i32
  }
}

</mosaic_0001>

<bundles_post_ra>
// kernel: tpu_custom_call.1
= control target key start
LH: loop header
LB: loop body
LE: loop exit
PB: predicated region body
PF: predicated region fallthrough
CT: control target
= control target key end

     0   :  { %v1792_v2 = vmov 0   ;;  %vm341_vm0 = vcmask 130048   ;;  %s2533_s0 = inlined_call_operand.vmem [shape: bf16[16,128], index: 0, kind: input, shape index: {}]   ;;  %s2534_s1 = inlined_call_operand.vmem [shape: bf16[256,16], index: 1, kind: input, shape index: {}]   ;;  %s2535_s2 = inlined_call_operand.vmem [shape: f32[256,1], index: 2, kind: input, shape index: {}]   ;;  %s2536_s3 = inlined_call_operand.vmem [shape: bf16[256,256], index: 3, kind: input, shape index: {}]   ;;  %s2537_s4 = inlined_call_operand.vmem [shape: f32[256,1], index: 4, kind: input, shape index: {}]   ;;  %s2538_s5 = inlined_call_operand.vmem [shape: f32[256,1], index: 5, kind: input, shape index: {}]   ;;  %s2539_s6 = inlined_call_operand.<no memory space> [shape: f32[1], index: 6, kind: input, shape index: {}]   ;;  %s2540_s7 = inlined_call_operand.hbm [shape: f32[1,128], index: 7, kind: output, shape index: {}]  }
   0x1   :  { %v79_v0 = vld [vmem:[%s2535_s2 + $0x80] sm:$0xff]  ;;  %1702 = vset.pattern.permute.xlu1 %v1792_v2  ;;  %1701 = vset.pattern.permute.xlu0 %v1792_v2  ;;  %v80_v4 = vld [vmem:[%s2535_s2 + $0x88] sm:$0xff]  ;;  %v1706_v8 = vld [vmem:[%s2534_s1 + $0x10] sm:$0xff]  }
   0x2   :  { %v63_v1 = vld [vmem:[%s2535_s2] sm:$0xff]  ;;  %177 = vperm.xlu0 %1701, %v79_v0   ;;  %v64_v5 = vld [vmem:[%s2535_s2 + $0x8] sm:$0xff]  ;;  %v81_v9 = vld [vmem:[%s2535_s2 + $0x90] sm:$0xff] }
   0x3   :  { %v1703_v3 = vld [vmem:[%s2533_s0] sm:$0xff]   ;;  %97 = vperm.xlu1 %1702, %v63_v1   ;;  %v1705_v7 = vld [vmem:[%s2534_s1 + $0x8] sm:$0xff]   ;;  %v82_v10 = vld [vmem:[%s2535_s2 + $0x98] sm:$0xff] }
   0x4   :  { %1649 = vmatprep.subr.bf16.mxu0 %v1703_v3  ;;  %v1704_v6 = vld [vmem:[%s2534_s1] sm:$0xff]   ;;  %v65_v11 = vld [vmem:[%s2535_s2 + $0x10] sm:$0xff]  ;;  %v66_v12 = vld [vmem:[%s2535_s2 + $0x18] sm:$0xff] }
   0x5   :  { %1650 = vmatpush3.bf16.msra.mxu0 %v1703_v3  ;;  %1651 = vmatprep.mubr.msk.bf16.mxu0 %vm341_vm0, %v1704_v6  ;;  %v1707_v13 = vld [vmem:[%s2534_s1 + $0x18] sm:$0xff]   ;;  %v1708_v14 = vld [vmem:[%s2534_s1 + $0x20] sm:$0xff]   ;;  %v84_v16 = vld [vmem:[%s2535_s2 + $0xa8] sm:$0xff] }
   0x6   :  { %182 = vperm.xlu0 %1701, %v80_v4   ;;  %v83_v15 = vld [vmem:[%s2535_s2 + $0xa0] sm:$0xff]  ;;  %v68_v18 = vld [vmem:[%s2535_s2 + $0x28] sm:$0xff]  ;;  %v1710_v20 = vld [vmem:[%s2534_s1 + $0x30] sm:$0xff]  }
   0x7   :  { %102 = vperm.xlu1 %1702, %v64_v5   ;;  %v67_v17 = vld [vmem:[%s2535_s2 + $0x20] sm:$0xff]  ;;  %v1709_v19 = vld [vmem:[%s2534_s1 + $0x28] sm:$0xff]   ;;  %v85_v21 = vld [vmem:[%s2535_s2 + $0xb0] sm:$0xff] }
   0x8   :  { %1652 = vmatmul.mubr.msk.bf16.vlgmr.msra.gmra.mrb[0].mxu0 %vm341_vm0, %v1705_v7  ;;  %v86_v22 = vld [vmem:[%s2535_s2 + $0xb8] sm:$0xff]  ;;  %v69_v23 = vld [vmem:[%s2535_s2 + $0x30] sm:$0xff]  ;;  %v1712_v26 = vld [vmem:[%s2534_s1 + $0x40] sm:$0xff]  }
   0x9   :  { %1655 = vmatprep.mubr.msk.bf16.mxu0 %vm341_vm0, %v1706_v8  ;;  %v70_v24 = vld [vmem:[%s2535_s2 + $0x38] sm:$0xff]  ;;  %v87_v27 = vld [vmem:[%s2535_s2 + $0xc0] sm:$0xff]  ;;  %v88_v28 = vld [vmem:[%s2535_s2 + $0xc8] sm:$0xff] }
   0xa   :  { %187 = vperm.xlu0 %1701, %v81_v9   ;;  %v1711_v25 = vld [vmem:[%s2534_s1 + $0x38] sm:$0xff]   ;;  %v71_v29 = vld [vmem:[%s2535_s2 + $0x40] sm:$0xff]  ;;  %v72_v30 = vld [vmem:[%s2535_s2 + $0x48] sm:$0xff] }
   0xb   :  { %192 = vperm.xlu1 %1702, %v82_v10   ;;  %v1713_v31 = vld [vmem:[%s2534_s1 + $0x48] sm:$0xff]   ;;  %v1714_v32 = vld [vmem:[%s2534_s1 + $0x50] sm:$0xff]   ;;  %v90_v34 = vld [vmem:[%s2535_s2 + $0xd8] sm:$0xff] }
   0xc   :  { %v89_v33 = vld [vmem:[%s2535_s2 + $0xd0] sm:$0xff]  ;;  %v74_v36 = vld [vmem:[%s2535_s2 + $0x58] sm:$0xff]  ;;  %v1716_v38 = vld [vmem:[%s2534_s1 + $0x60] sm:$0xff]  }
   0xd   :  { %v73_v35 = vld [vmem:[%s2535_s2 + $0x50] sm:$0xff]  ;;  %v1715_v37 = vld [vmem:[%s2534_s1 + $0x58] sm:$0xff]   ;;  %v91_v39 = vld [vmem:[%s2535_s2 + $0xe0] sm:$0xff] }
   0xe   :  { %107 = vperm.xlu0 %1701, %v65_v11   ;;  %v92_v40 = vld [vmem:[%s2535_s2 + $0xe8] sm:$0xff]  ;;  %v75_v41 = vld [vmem:[%s2535_s2 + $0x60] sm:$0xff]  ;;  %v1718_v44 = vld [vmem:[%s2534_s1 + $0x70] sm:$0xff]  }
   0xf   :  { %112 = vperm.xlu1 %1702, %v66_v12   ;;  %v76_v42 = vld [vmem:[%s2535_s2 + $0x68] sm:$0xff]  ;;  %v93_v45 = vld [vmem:[%s2535_s2 + $0xf0] sm:$0xff]  ;;  %v94_v46 = vld [vmem:[%s2535_s2 + $0xf8] sm:$0xff] }
  0x10   :  { %1656 = vmatmul.mubr.msk.bf16.gmra.mrb[4].mxu0 %vm341_vm0, %v1707_v13  ;;  %v1717_v43 = vld [vmem:[%s2534_s1 + $0x68] sm:$0xff]   ;;  %v77_v47 = vld [vmem:[%s2535_s2 + $0x70] sm:$0xff]  ;;  %v78_v48 = vld [vmem:[%s2535_s2 + $0x78] sm:$0xff] }
  0x11   :  { %1659 = vmatprep.mubr.msk.bf16.mxu0 %vm341_vm0, %v1708_v14  ;;  %v1719_v49 = vld [vmem:[%s2534_s1 + $0x78] sm:$0xff]  }
  0x12   :  { %197 = vperm.xlu0 %1701, %v83_v15  }
  0x13   :  { %202 = vperm.xlu1 %1702, %v84_v16  }
  0x16   :  { %117 = vperm.xlu0 %1701, %v67_v17  }
  0x17   :  { %122 = vperm.xlu1 %1702, %v68_v18  }
  0x18   :  { %1660 = vmatmul.mubr.msk.bf16.gmra.mrb[8].mxu0 %vm341_vm0, %v1709_v19 }
  0x19   :  { %1663 = vmatprep.mubr.msk.bf16.mxu0 %vm341_vm0, %v1710_v20 }
  0x1a   :  { %207 = vperm.xlu0 %1701, %v85_v21  }
  0x1b   :  { %212 = vperm.xlu1 %1702, %v86_v22  }
  0x1e   :  { %127 = vperm.xlu0 %1701, %v69_v23  }
  0x1f   :  { %132 = vperm.xlu1 %1702, %v70_v24  }
  0x20   :  { %1664 = vmatmul.mubr.msk.bf16.gmra.mrb[12].mxu0 %vm341_vm0, %v1711_v25 }
  0x21   :  { %1667 = vmatprep.mubr.msk.bf16.mxu0 %vm341_vm0, %v1712_v26 }
  0x22   :  { %217 = vperm.xlu0 %1701, %v87_v27  }
  0x23   :  { %222 = vperm.xlu1 %1702, %v88_v28  }
  0x26   :  { %137 = vperm.xlu0 %1701, %v71_v29  }
  0x27   :  { %142 = vperm.xlu1 %1702, %v72_v30  }
  0x28   :  { %1668 = vmatmul.mubr.msk.bf16.gmra.mrb[16].mxu0 %vm341_vm0, %v1713_v31 }
  0x29   :  { %1671 = vmatprep.mubr.msk.bf16.mxu0 %vm341_vm0, %v1714_v32 }
  0x2a   :  { %227 = vperm.xlu0 %1701, %v89_v33  }
  0x2b   :  { %232 = vperm.xlu1 %1702, %v90_v34  }
  0x2e   :  { %147 = vperm.xlu0 %1701, %v73_v35  }
  0x2f   :  { %152 = vperm.xlu1 %1702, %v74_v36  }
  0x30   :  { %1672 = vmatmul.mubr.msk.bf16.gmra.mrb[20].mxu0 %vm341_vm0, %v1715_v37 }
  0x31   :  { %1675 = vmatprep.mubr.msk.bf16.mxu0 %vm341_vm0, %v1716_v38 }
  0x32   :  { %237 = vperm.xlu0 %1701, %v91_v39  }
  0x33   :  { %242 = vperm.xlu1 %1702, %v92_v40  }
  0x36   :  { %157 = vperm.xlu0 %1701, %v75_v41  }
  0x37   :  { %162 = vperm.xlu1 %1702, %v76_v42  }
  0x38   :  { %1676 = vmatmul.mubr.msk.bf16.gmra.mrb[24].mxu0 %vm341_vm0, %v1717_v43 }
  0x39   :  { %1679 = vmatprep.mubr.msk.bf16.mxu0 %vm341_vm0, %v1718_v44 }
  0x3a   :  { %247 = vperm.xlu0 %1701, %v93_v45  }
  0x3b   :  { %252 = vperm.xlu1 %1702, %v94_v46  }
  0x3c   :  { %13 = vsyncpa [#allocation4], 0  ;;  %v631_v50 = vld [vmem:[%s2537_s4] sm:$0xff]  ;;  %v632_v51 = vld [vmem:[%s2537_s4 + $0x8] sm:$0xff]  ;;  %s1793_s30 = smov [#allocation3]  }
  0x3d   :  { %v633_v52 = vld [vmem:[%s2537_s4 + $0x10] sm:$0xff]  ;;  %v634_v53 = vld [vmem:[%s2537_s4 + $0x18] sm:$0xff]  ;;  %v635_v54 = vld [vmem:[%s2537_s4 + $0x20] sm:$0xff]  ;;  %s1447_s1 = sshll.u32 %s1793_s30, 4  ;;  %s1448_s1 = int_to_ptr.vmem [resolvable:$true] %s1447_s1 }
  0x3e   :  { %167 = vperm.xlu0 %1701, %v77_v47   ;;  %v636_v55 = vld [vmem:[%s2537_s4 + $0x28] sm:$0xff]  ;;  %v637_v56 = vld [vmem:[%s2537_s4 + $0x30] sm:$0xff]  ;;  %v638_v57 = vld [vmem:[%s2537_s4 + $0x38] sm:$0xff]  ;;  %s1768_s8 = scalar_lea.vmem %s1448_s1, 16  ;;  %s1772_s9 = scalar_lea.vmem %s1448_s1, 32 }
  0x3f   :  { %172 = vperm.xlu1 %1702, %v78_v48   ;;  %v639_v58 = vld [vmem:[%s2537_s4 + $0x40] sm:$0xff]  ;;  %v640_v59 = vld [vmem:[%s2537_s4 + $0x48] sm:$0xff]  ;;  %v641_v60 = vld [vmem:[%s2537_s4 + $0x50] sm:$0xff]  ;;  %p1769_p0 = scmp.ne.s32.totalorder %s1448_s1, %s1768_s8  ;;  %p1773_p1 = scmp.lt.s32.totalorder %s1448_s1, %s1448_s1 }
  0x40   :  { %1680 = vmatmul.mubr.msk.bf16.gmra.mrb[28].mxu0 %vm341_vm0, %v1719_v49  ;;  %v642_v61 = vld [vmem:[%s2537_s4 + $0x58] sm:$0xff]  ;;  %v643_v62 = vld [vmem:[%s2537_s4 + $0x60] sm:$0xff]  ;;  %v644_v63 = vld [vmem:[%s2537_s4 + $0x68] sm:$0xff]  ;;  %p1774_p2 = scmp.lt.s32.totalorder %s1772_s9, %s1768_s8 }
  0x41   :  { %v645_v0 = vld [vmem:[%s2537_s4 + $0x70] sm:$0xff]  ;;  %v646_v1 = vld [vmem:[%s2537_s4 + $0x78] sm:$0xff]  ;;  %v647_v2 = vld [vmem:[%s2537_s4 + $0x80] sm:$0xff] }
  0x42   :  { %665 = vperm.xlu0 %1701, %v631_v50   ;;  %v648_v3 = vld [vmem:[%s2537_s4 + $0x88] sm:$0xff]  ;;  %v649_v4 = vld [vmem:[%s2537_s4 + $0x90] sm:$0xff]  ;;  %v650_v5 = vld [vmem:[%s2537_s4 + $0x98] sm:$0xff]  ;;  %p1775_p3 = por %p1774_p2, %p1773_p1 }
  0x43   :  { %670 = vperm.xlu1 %1702, %v632_v51   ;;  %v651_v6 = vld [vmem:[%s2537_s4 + $0xa0] sm:$0xff]  ;;  %v652_v7 = vld [vmem:[%s2537_s4 + $0xa8] sm:$0xff]  ;;  %v653_v8 = vld [vmem:[%s2537_s4 + $0xb0] sm:$0xff] }
  0x44   :  { %v654_v9 = vld [vmem:[%s2537_s4 + $0xb8] sm:$0xff]  ;;  %v655_v10 = vld [vmem:[%s2537_s4 + $0xc0] sm:$0xff]  ;;  %v656_v11 = vld [vmem:[%s2537_s4 + $0xc8] sm:$0xff]  ;;  %p1776_p4 = pnand %p1775_p3, %p1769_p0 }
  0x45   :  { %v657_v12 = vld [vmem:[%s2537_s4 + $0xd0] sm:$0xff]  ;;  %v658_v13 = vld [vmem:[%s2537_s4 + $0xd8] sm:$0xff]  ;;  %v1176_v14 = vld [vmem:[%s2538_s5] sm:$0xff] }
  0x46   :  { %675 = vperm.xlu0 %1701, %v633_v52   ;;  %v1177_v15 = vld [vmem:[%s2538_s5 + $0x8] sm:$0xff]  ;;  %v1178_v16 = vld [vmem:[%s2538_s5 + $0x10] sm:$0xff]  ;;  %v1179_v17 = vld [vmem:[%s2538_s5 + $0x18] sm:$0xff] }
  0x47   :  { %680 = vperm.xlu1 %1702, %v634_v53   ;;  %v1180_v18 = vld [vmem:[%s2538_s5 + $0x20] sm:$0xff]  ;;  %v1181_v19 = vld [vmem:[%s2538_s5 + $0x28] sm:$0xff]  ;;  %v1182_v20 = vld [vmem:[%s2538_s5 + $0x30] sm:$0xff] }
  0x48   :  { %v1183_v21 = vld [vmem:[%s2538_s5 + $0x38] sm:$0xff]  ;;  %v1184_v22 = vld [vmem:[%s2538_s5 + $0x40] sm:$0xff]  ;;  %v1185_v23 = vld [vmem:[%s2538_s5 + $0x48] sm:$0xff] }
  0x49   :  { %v1186_v24 = vld [vmem:[%s2538_s5 + $0x50] sm:$0xff]  ;;  %v1187_v25 = vld [vmem:[%s2538_s5 + $0x58] sm:$0xff]  ;;  %v1188_v26 = vld [vmem:[%s2538_s5 + $0x60] sm:$0xff] }
  0x4a   :  { %685 = vperm.xlu0 %1701, %v635_v54   ;;  %v1189_v27 = vld [vmem:[%s2538_s5 + $0x68] sm:$0xff]  ;;  %v1190_v28 = vld [vmem:[%s2538_s5 + $0x70] sm:$0xff]  ;;  %v1191_v29 = vld [vmem:[%s2538_s5 + $0x78] sm:$0xff] }
  0x4b   :  { %690 = vperm.xlu1 %1702, %v636_v55   ;;  %v1192_v30 = vld [vmem:[%s2538_s5 + $0x80] sm:$0xff]  ;;  %v1193_v31 = vld [vmem:[%s2538_s5 + $0x88] sm:$0xff]  ;;  %v1194_v34 = vld [vmem:[%s2538_s5 + $0x90] sm:$0xff] }
  0x4c   :  { %v1195_v35 = vld [vmem:[%s2538_s5 + $0x98] sm:$0xff]  ;;  %v1196_v37 = vld [vmem:[%s2538_s5 + $0xa0] sm:$0xff]  ;;  %v1197_v38 = vld [vmem:[%s2538_s5 + $0xa8] sm:$0xff] }
  0x4d   :  { %v1722_v40 = vld [vmem:[%s2536_s3 + $0x4] ss:$8 sps:$4 sm:$0xff]   ;;  %v1198_v41 = vld [vmem:[%s2538_s5 + $0xb0] sm:$0xff]  ;;  %v1199_v42 = vld [vmem:[%s2538_s5 + $0xb8] sm:$0xff] }
  0x4e   :  { %695 = vperm.xlu0 %1701, %v637_v56   ;;  %v1725_v43 = vld [vmem:[%s2536_s3 + $0x54] ss:$8 sps:$4 sm:$0xff]   ;;  %1015 = vmatprep.mubr.bf16.mxu0 %v1722_v40  ;;  %v1200_v46 = vld [vmem:[%s2538_s5 + $0xc0] sm:$0xff]  ;;  %v1201_v47 = vld [vmem:[%s2538_s5 + $0xc8] sm:$0xff] }
  0x4f   :  { %700 = vperm.xlu1 %1702, %v638_v57   ;;  %1055 = vmatprep.mubr.bf16.mxu1 %v1725_v43  ;;  %v659_v49 = vld [vmem:[%s2537_s4 + $0xe0] sm:$0xff]  ;;  %v1202_v50 = vld [vmem:[%s2538_s5 + $0xd0] sm:$0xff]  ;;  %v660_v52 = vld [vmem:[%s2537_s4 + $0xe8] sm:$0xff] }
  0x50   :  { %v1203_v53 = vld [vmem:[%s2538_s5 + $0xd8] sm:$0xff]  ;;  %v661_v56 = vld [vmem:[%s2537_s4 + $0xf0] sm:$0xff]  ;;  %v1204_v57 = vld [vmem:[%s2538_s5 + $0xe0] sm:$0xff] }
  0x52   :  { %705 = vperm.xlu0 %1701, %v639_v58  }
  0x53   :  { %710 = vperm.xlu1 %1702, %v640_v59   ;;  %v662_v59 = vld [vmem:[%s2537_s4 + $0xf8] sm:$0xff] }
  0x56   :  { %715 = vperm.xlu0 %1701, %v641_v60   ;;  %v1205_v60 = vld [vmem:[%s2538_s5 + $0xe8] sm:$0xff] }
  0x57   :  { %720 = vperm.xlu1 %1702, %v642_v61  }
  0x5a   :  { %725 = vperm.xlu0 %1701, %v643_v62   ;;  %v1206_v62 = vld [vmem:[%s2538_s5 + $0xf0] sm:$0xff] }
  0x5b   :  { %730 = vperm.xlu1 %1702, %v644_v63   ;;  %v1207_v63 = vld [vmem:[%s2538_s5 + $0xf8] sm:$0xff] }
  0x5e   :  { %735 = vperm.xlu0 %1701, %v645_v0  }
  0x5f   :  { %740 = vperm.xlu1 %1702, %v646_v1  }
  0x62   :  { %745 = vperm.xlu0 %1701, %v647_v2  }
  0x63   :  { %750 = vperm.xlu1 %1702, %v648_v3  }
  0x66   :  { %755 = vperm.xlu0 %1701, %v649_v4  }
  0x67   :  { %760 = vperm.xlu1 %1702, %v650_v5  }
  0x6a   :  { %765 = vperm.xlu0 %1701, %v651_v6  }
  0x6b   :  { %770 = vperm.xlu1 %1702, %v652_v7  }
  0x6e   :  { %775 = vperm.xlu0 %1701, %v653_v8  }
  0x6f   :  { %780 = vperm.xlu1 %1702, %v654_v9  }
  0x72   :  { %785 = vperm.xlu0 %1701, %v655_v10  }
  0x73   :  { %790 = vperm.xlu1 %1702, %v656_v11  }
  0x76   :  { %795 = vperm.xlu0 %1701, %v657_v12  }
  0x77   :  { %800 = vperm.xlu1 %1702, %v658_v13  }
  0x7a   :  { %1210 = vperm.xlu0 %1701, %v1176_v14  }
  0x7b   :  { %1215 = vperm.xlu1 %1702, %v1177_v15  }
  0x7e   :  { %1220 = vperm.xlu0 %1701, %v1178_v16  }
  0x7f   :  { %1225 = vperm.xlu1 %1702, %v1179_v17  }
  0x81   :  { %v2135_v32 = vpop.permute.xlu0 %177 }
  0x82   :  { %1230 = vperm.xlu0 %1701, %v1180_v18   ;;  %v2137_v33 = vpop.permute.xlu1 %97 }
  0x83   :  { %1235 = vperm.xlu1 %1702, %v1181_v19  }
  0x85   :  { %v2145_v36 = vpop.permute.xlu0 %182 }
  0x86   :  { %1240 = vperm.xlu0 %1701, %v1182_v20   ;;  %v2153_v39 = vpop.permute.xlu1 %102 }
  0x87   :  { %1245 = vperm.xlu1 %1702, %v1183_v21  }
  0x89   :  { %v2167_v44 = vpop.permute.xlu0 %187 }
  0x8a   :  { %1250 = vperm.xlu0 %1701, %v1184_v22   ;;  %v2169_v45 = vpop.permute.xlu1 %192 }
  0x8b   :  { %1255 = vperm.xlu1 %1702, %v1185_v23  }
  0x8d   :  { %v108_v48 = vpop.permute.xlu0 %107 }
  0x8e   :  { %1260 = vperm.xlu0 %1701, %v1186_v24   ;;  %v113_v51 = vpop.permute.xlu1 %112 }
  0x8f   :  { %1265 = vperm.xlu1 %1702, %v1187_v25  }
  0x91   :  { %v2189_v54 = vpop.permute.xlu0 %197 }
  0x92   :  { %1270 = vperm.xlu0 %1701, %v1188_v26   ;;  %v2191_v55 = vpop.permute.xlu1 %202 }
  0x93   :  { %1275 = vperm.xlu1 %1702, %v1189_v27  }
  0x95   :  { %v118_v58 = vpop.permute.xlu0 %117 }
  0x96   :  { %1280 = vperm.xlu0 %1701, %v1190_v28   ;;  %v123_v61 = vpop.permute.xlu1 %122 }
  0x97   :  { %1285 = vperm.xlu1 %1702, %v1191_v29  }
  0x99   :  { %v2211_v0 = vpop.permute.xlu0 %207 }
  0x9a   :  { %1290 = vperm.xlu0 %1701, %v1192_v30   ;;  %v2213_v1 = vpop.permute.xlu1 %212 }
  0x9b   :  { %1295 = vperm.xlu1 %1702, %v1193_v31  }
  0x9d   :  { %v128_v2 = vpop.permute.xlu0 %127 }
  0x9e   :  { %1300 = vperm.xlu0 %1701, %v1194_v34   ;;  %v133_v3 = vpop.permute.xlu1 %132 }
  0x9f   :  { %1305 = vperm.xlu1 %1702, %v1195_v35  }
  0xa1   :  { %v2215_v4 = vpop.permute.xlu0 %217 }
  0xa2   :  { %1310 = vperm.xlu0 %1701, %v1196_v37   ;;  %v2217_v5 = vpop.permute.xlu1 %222 }
  0xa3   :  { %1315 = vperm.xlu1 %1702, %v1197_v38  }
  0xa5   :  { %v138_v6 = vpop.permute.xlu0 %137 }
  0xa6   :  { %1320 = vperm.xlu0 %1701, %v1198_v41   ;;  %v143_v7 = vpop.permute.xlu1 %142 }
  0xa7   :  { %1325 = vperm.xlu1 %1702, %v1199_v42  }
  0xa9   :  { %v2219_v8 = vpop.permute.xlu0 %227 }
  0xaa   :  { %1330 = vperm.xlu0 %1701, %v1200_v46   ;;  %v2221_v9 = vpop.permute.xlu1 %232 }
  0xab   :  { %1335 = vperm.xlu1 %1702, %v1201_v47  }
  0xad   :  { %v148_v10 = vpop.permute.xlu0 %147 }
  0xae   :  { %805 = vperm.xlu0 %1701, %v659_v49   ;;  %v153_v14 = vpop.permute.xlu1 %152 }
  0xaf   :  { %1340 = vperm.xlu1 %1702, %v1202_v50  }
  0xb1   :  { %v2225_v22 = vpop.permute.xlu0 %237 }
  0xb2   :  { %810 = vperm.xlu0 %1701, %v660_v52   ;;  %v2229_v26 = vpop.permute.xlu1 %242 }
  0xb3   :  { %1345 = vperm.xlu1 %1702, %v1203_v53  }
  0xb5   :  { %v158_v35 = vpop.permute.xlu0 %157 }
  0xb6   :  { %815 = vperm.xlu0 %1701, %v661_v56   ;;  %v163_v41 = vpop.permute.xlu1 %162 }
  0xb7   :  { %1350 = vperm.xlu1 %1702, %v1204_v57  }
  0xba   :  { %820 = vperm.xlu0 %1701, %v662_v59   ;;  %v2239_v57 = vpop.permute.xlu1 %252 }
  0xbb   :  { %1355 = vperm.xlu1 %1702, %v1205_v60  }
  0xbe   :  { %1360 = vperm.xlu0 %1701, %v1206_v62  }
  0xbf   :  { %1365 = vperm.xlu1 %1702, %v1207_v63  }
  0xdb   :  { %v1653_v11 = vpop.f32.mrb[0].mxu0 }
  0xdc   :  { %v433_v12 = vadd.f32 %v1653_v11, %v108_v48  ;;  %v424_v13 = vpop.f32.mrb[1].mxu0 }
  0xdd   :  { %v1654_v15 = vpop.f32.mrb[2].mxu0  ;;  %v425_v16 = vadd.f32 %v424_v13, %v2137_v33 }
  0xde   :  { %v436_v17 = vadd.f32 %v1654_v15, %v113_v51  ;;  %v427_v18 = vpop.f32.mrb[3].mxu0  ;;  %v553_v19 = vmax.f32 %v433_v12, 0.0  ;;  %v2237_v51 = vpop.permute.xlu0 %247 }
  0xdf   :  { %v428_v21 = vadd.f32 %v427_v18, %v2153_v39  ;;  %v551_v23 = vmax.f32 %v425_v16, 0.0  ;;  %v173_v15 = vpop.permute.xlu1 %172 }
  0xe0   :  { %v554_v20 = vmax.f32 %v436_v17, 0.0 }
  0xe1   :  { %v552_v25 = vmax.f32 %v428_v21, 0.0 }
  0xe2   :  { %v2227_v24 = vpack.c.bf16 %v554_v20, %v553_v19 }
  0xe3   :  { %v1657_v27 = vpop.f32.mrb[4].mxu0  ;;  %v2231_v28 = vpack.c.bf16 %v552_v25, %v551_v23 }
  0xe4   :  { %v449_v29 = vadd.f32 %v1657_v27, %v128_v2  ;;  %v440_v30 = vpop.f32.mrb[5].mxu0 }
  0xe5   :  { %v1658_v31 = vpop.f32.mrb[6].mxu0  ;;  %v441_v33 = vadd.f32 %v440_v30, %v118_v58 }
  0xe6   :  { %v452_v34 = vadd.f32 %v1658_v31, %v133_v3  ;;  %v443_v37 = vpop.f32.mrb[7].mxu0  ;;  %v557_v38 = vmax.f32 %v449_v29, 0.0  ;;  %v168_v3 = vpop.permute.xlu0 %167 }
  0xe7   :  { %v444_v40 = vadd.f32 %v443_v37, %v123_v61  ;;  %v555_v42 = vmax.f32 %v441_v33, 0.0 }
  0xe8   :  { %v558_v39 = vmax.f32 %v452_v34, 0.0 }
  0xe9   :  { %v556_v46 = vmax.f32 %v444_v40, 0.0 }
  0xea   :  { %v2233_v43 = vpack.c.bf16 %v558_v39, %v557_v38 }
  0xeb   :  { %v1661_v47 = vpop.f32.mrb[8].mxu0  ;;  %v2235_v48 = vpack.c.bf16 %v556_v46, %v555_v42 }
  0xec   :  { %v465_v49 = vadd.f32 %v1661_v47, %v148_v10  ;;  %v456_v50 = vpop.f32.mrb[9].mxu0 }
  0xed   :  { %v1662_v52 = vpop.f32.mrb[10].mxu0  ;;  %v457_v53 = vadd.f32 %v456_v50, %v138_v6 }
  0xee   :  { %v468_v56 = vadd.f32 %v1662_v52, %v153_v14  ;;  %v459_v58 = vpop.f32.mrb[11].mxu0  ;;  %v561_v59 = vmax.f32 %v465_v49, 0.0 }
  0xef   :  { %v460_v61 = vadd.f32 %v459_v58, %v143_v7  ;;  %v559_v62 = vmax.f32 %v457_v53, 0.0 }
  0xf0   :  { %v562_v60 = vmax.f32 %v468_v56, 0.0 }
  0xf1   :  { %v560_v2 = vmax.f32 %v460_v61, 0.0 }
  0xf2   :  { %v2241_v63 = vpack.c.bf16 %v562_v60, %v561_v59 }
  0xf3   :  { %v1665_v11 = vpop.f32.mrb[12].mxu0  ;;  %v2243_v12 = vpack.c.bf16 %v560_v2, %v559_v62 }
  0xf4   :  { %v481_v10 = vadd.f32 %v1665_v11, %v168_v3  ;;  %v472_v13 = vpop.f32.mrb[13].mxu0 }
  0xf5   :  { %v1666_v16 = vpop.f32.mrb[14].mxu0  ;;  %v473_v6 = vadd.f32 %v472_v13, %v158_v35 }
  0xf6   :  { %v484_v14 = vadd.f32 %v1666_v16, %v173_v15  ;;  %v475_v17 = vpop.f32.mrb[15].mxu0  ;;  %v565_v18 = vmax.f32 %v481_v10, 0.0 }
  0xf7   :  { %v476_v20 = vadd.f32 %v475_v17, %v163_v41  ;;  %v563_v21 = vmax.f32 %v473_v6, 0.0 }
  0xf8   :  { %v566_v19 = vmax.f32 %v484_v14, 0.0 }
  0xf9   :  { %v564_v23 = vmax.f32 %v476_v20, 0.0 }
  0xfa   :  { %v2245_v7 = vpack.c.bf16 %v566_v19, %v565_v18 }
  0xfb   :  { %v1669_v25 = vpop.f32.mrb[16].mxu0  ;;  %v2247_v27 = vpack.c.bf16 %v564_v23, %v563_v21  ;;  %v1730_v21 = vld [vmem:[%s2536_s3 + $0x10] ss:$8 sps:$4 sm:$0xff]   ;;  %v1732_v23 = vld [vmem:[%s2536_s3 + $0x24] ss:$8 sps:$4 sm:$0xff]  }
  0xfc   :  { %v497_v29 = vadd.f32 %v1669_v25, %v2167_v44  ;;  %v488_v30 = vpop.f32.mrb[17].mxu0  ;;  %v1734_v25 = vld [vmem:[%s2536_s3 + $0x74] ss:$8 sps:$4 sm:$0xff]  }
  0xfd   :  { %v1670_v31 = vpop.f32.mrb[18].mxu0  ;;  %v489_v33 = vadd.f32 %v488_v30, %v2135_v32  ;;  %v1738_v30 = vld [vmem:[%s2536_s3 + $0x34] ss:$8 sps:$4 sm:$0xff]  }
  0xfe   :  { %v500_v34 = vadd.f32 %v1670_v31, %v2169_v45  ;;  %v491_v35 = vpop.f32.mrb[19].mxu0  ;;  %v569_v37 = vmax.f32 %v497_v29, 0.0  ;;  %v1737_v29 = vld [vmem:[%s2536_s3 + $0x70] ss:$8 sps:$4 sm:$0xff]   ;;  %v1740_v31 = vld [vmem:[%s2536_s3 + $0x84] ss:$8 sps:$4 sm:$0xff]  }
  0xff   :  { %v492_v39 = vadd.f32 %v491_v35, %v2145_v36  ;;  %v567_v40 = vmax.f32 %v489_v33, 0.0  ;;  %v1742_v33 = vld [vmem:[%s2536_s3 + $0x30] ss:$8 sps:$4 sm:$0xff]   ;;  %v1744_v35 = vld [vmem:[%s2536_s3 + $0x44] ss:$8 sps:$4 sm:$0xff]  }
 0x100   :  { %v570_v38 = vmax.f32 %v500_v34, 0.0  ;;  %v1743_v34 = vld [vmem:[%s2536_s3 + $0x80] ss:$8 sps:$4 sm:$0xff]  }
 0x101   :  { %v568_v42 = vmax.f32 %v492_v39, 0.0  ;;  %v1749_v39 = vld [vmem:[%s2536_s3 + $0x90] ss:$8 sps:$4 sm:$0xff]  }
 0x102   :  { %v624_v41 = vpack.c.bf16 %v570_v38, %v569_v37  ;;  %v1746_v37 = vld [vmem:[%s2536_s3 + $0x94] ss:$8 sps:$4 sm:$0xff]   ;;  %v1748_v38 = vld [vmem:[%s2536_s3 + $0x40] ss:$8 sps:$4 sm:$0xff]  }
 0x103   :  { %v1673_v46 = vpop.f32.mrb[20].mxu0  ;;  %v623_v47 = vpack.c.bf16 %v568_v42, %v567_v40  ;;  %v1750_v40 = vld [vmem:[%s2536_s3 + $0xa4] ss:$8 sps:$4 sm:$0xff]   ;;  %v1753_v42 = vld [vmem:[%s2536_s3 + $0xb4] ss:$8 sps:$4 sm:$0xff]  }
 0x104   :  { %v513_v49 = vadd.f32 %v1673_v46, %v2211_v0  ;;  %v504_v50 = vpop.f32.mrb[21].mxu0  ;;  %v1755_v46 = vld [vmem:[%s2536_s3 + $0xb0] ss:$8 sps:$4 sm:$0xff]  }
 0x105   :  { %v1674_v44 = vpop.f32.mrb[22].mxu0  ;;  %v505_v52 = vadd.f32 %v504_v50, %v2189_v54  ;;  %1537 = vmatprep.subr.bf16.mxu0 %v623_v47  ;;  %1683 = vmatprep.subr.bf16.mxu1 %v623_v47  ;;  %v1756_v47 = vld [vmem:[%s2536_s3 + $0xc4] ss:$8 sps:$4 sm:$0xff]   ;;  %v1759_v50 = vld [vmem:[%s2536_s3 + $0xd4] ss:$8 sps:$4 sm:$0xff]  }
 0x106   :  { %v516_v32 = vadd.f32 %v1674_v44, %v2213_v1  ;;  %v507_v45 = vpop.f32.mrb[23].mxu0  ;;  %1538 = vmatpush3.bf16.msra.mxu0 %v2231_v28  ;;  %1691 = vmatpush3.bf16.msra.mxu1 %v2231_v28  ;;  %v573_v36 = vmax.f32 %v513_v49, 0.0  ;;  %v1758_v49 = vld [vmem:[%s2536_s3 + $0xc0] ss:$8 sps:$4 sm:$0xff]   ;;  %v1761_v44 = vld [vmem:[%s2536_s3 + $0xd0] ss:$8 sps:$4 sm:$0xff]  }
 0x107   :  { %v508_v56 = vadd.f32 %v507_v45, %v2191_v55  ;;  %1539 = vmatprep.subr.bf16.mxu0 %v624_v41  ;;  %1684 = vmatprep.subr.bf16.mxu1 %v624_v41  ;;  %v571_v0 = vmax.f32 %v505_v52, 0.0  ;;  %v1752_v41 = vld [vmem:[%s2536_s3 + $0xa0] ss:$8 sps:$4 sm:$0xff]   ;;  %v1762_v52 = vld [vmem:[%s2536_s3 + $0xe4] ss:$8 sps:$4 sm:$0xff]  }
 0x108   :  { %v574_v53 = vmax.f32 %v516_v32, 0.0  ;;  %v1764_v32 = vld [vmem:[%s2536_s3 + $0xe0] ss:$8 sps:$4 sm:$0xff]   ;;  %v1765_v45 = vld [vmem:[%s2536_s3 + $0xf4] ss:$8 sps:$4 sm:$0xff]  }
 0x109   :  { %v572_v59 = vmax.f32 %v508_v56, 0.0  ;;  %v671_v56 = vpop.permute.xlu1 %670 }
 0x10a   :  { %v626_v58 = vpack.c.bf16 %v574_v53, %v573_v36  ;;  %1540 = vmatpush3.bf16.msra.mxu0 %v2227_v24  ;;  %1692 = vmatpush3.bf16.msra.mxu1 %v2227_v24  ;;  %v1767_v36 = vld [vmem:[%s2536_s3 + $0xf0] ss:$8 sps:$4 sm:$0xff]   ;;  %v666_v53 = vpop.permute.xlu0 %665 }
 0x10b   :  { %v1677_v54 = vpop.f32.mrb[24].mxu0  ;;  %v625_v1 = vpack.c.bf16 %v572_v59, %v571_v0 }
 0x10c   :  { %v529_v60 = vadd.f32 %v1677_v54, %v2219_v8  ;;  %v520_v61 = vpop.f32.mrb[25].mxu0 }
 0x10d   :  { %v1678_v62 = vpop.f32.mrb[26].mxu0  ;;  %v521_v28 = vadd.f32 %v520_v61, %v2215_v4  ;;  %1541 = vmatprep.subr.bf16.mxu0 %v625_v1  ;;  %1685 = vmatprep.subr.bf16.mxu1 %v625_v1 }
 0x10e   :  { %v532_v2 = vadd.f32 %v1678_v62, %v2221_v9  ;;  %v523_v55 = vpop.f32.mrb[27].mxu0  ;;  %1542 = vmatpush3.bf16.msra.mxu0 %v2235_v48  ;;  %1693 = vmatpush3.bf16.msra.mxu1 %v2235_v48  ;;  %v577_v3 = vmax.f32 %v529_v60, 0.0  ;;  %v2371_v0 = vpop.permute.xlu0 %675 }
 0x10f   :  { %v524_v24 = vadd.f32 %v523_v55, %v2217_v5  ;;  %1543 = vmatprep.subr.bf16.mxu0 %v626_v58  ;;  %1686 = vmatprep.subr.bf16.mxu1 %v626_v58  ;;  %v575_v8 = vmax.f32 %v521_v28, 0.0  ;;  %v2373_v58 = vpop.permute.xlu1 %680 }
 0x110   :  { %v578_v11 = vmax.f32 %v532_v2, 0.0 }
 0x111   :  { %v576_v13 = vmax.f32 %v524_v24, 0.0 }
 0x112   :  { %v628_v10 = vpack.c.bf16 %v578_v11, %v577_v3  ;;  %1544 = vmatpush3.bf16.msra.mxu0 %v2233_v43  ;;  %1694 = vmatpush3.bf16.msra.mxu1 %v2233_v43  ;;  %v2375_v59 = vpop.permute.xlu0 %685 }
 0x113   :  { %v1681_v4 = vpop.f32.mrb[28].mxu0  ;;  %v627_v9 = vpack.c.bf16 %v576_v13, %v575_v8  ;;  %v2377_v54 = vpop.permute.xlu1 %690 }
 0x114   :  { %v545_v15 = vadd.f32 %v1681_v4, %v2237_v51  ;;  %v536_v16 = vpop.f32.mrb[29].mxu0 }
 0x115   :  { %v1682_v6 = vpop.f32.mrb[30].mxu0  ;;  %v537_v48 = vadd.f32 %v536_v16, %v2225_v22  ;;  %1545 = vmatprep.subr.bf16.mxu0 %v627_v9  ;;  %1687 = vmatprep.subr.bf16.mxu1 %v627_v9 }
 0x116   :  { %v548_v14 = vadd.f32 %v1682_v6, %v2239_v57  ;;  %v539_v5 = vpop.f32.mrb[31].mxu0  ;;  %1546 = vmatpush3.bf16.msra.mxu0 %v2243_v12  ;;  %1695 = vmatpush3.bf16.msra.mxu1 %v2243_v12  ;;  %v581_v17 = vmax.f32 %v545_v15, 0.0  ;;  %v1723_v57 = vld [vmem:[%s2536_s3 + $0x50] ss:$8 sps:$4 sm:$0xff]   ;;  %v1728_v12 = vld [vmem:[%s2536_s3 + $0x64] ss:$8 sps:$4 sm:$0xff]   ;;  %v2379_v1 = vpop.permute.xlu0 %695 }
 0x117   :  { %v540_v43 = vadd.f32 %v539_v5, %v2229_v26  ;;  %1547 = vmatprep.subr.bf16.mxu0 %v628_v10  ;;  %1688 = vmatprep.subr.bf16.mxu1 %v628_v10  ;;  %v579_v51 = vmax.f32 %v537_v48, 0.0  ;;  %v1720_v26 = vld [vmem:[%s2536_s3] ss:$8 sps:$4 sm:$0xff]   ;;  %v2381_v60 = vpop.permute.xlu1 %700 }
 0x118   :  { %v582_v18 = vmax.f32 %v548_v14, 0.0 }
 0x119   :  { %v580_v20 = vmax.f32 %v540_v43, 0.0 }
 0x11a   :  { %v630_v19 = vpack.c.bf16 %v582_v18, %v581_v17  ;;  %1548 = vmatpush3.bf16.msra.mxu0 %v2241_v63  ;;  %1696 = vmatpush3.bf16.msra.mxu1 %v2241_v63  ;;  %v1726_v63 = vld [vmem:[%s2536_s3 + $0x14] ss:$8 sps:$4 sm:$0xff]   ;;  %v2383_v61 = vpop.permute.xlu0 %705 }
 0x11b   :  { %v629_v22 = vpack.c.bf16 %v580_v20, %v579_v51  ;;  %v2385_v62 = vpop.permute.xlu1 %710 }
 0x11d   :  { %1549 = vmatprep.subr.bf16.mxu0 %v629_v22  ;;  %1689 = vmatprep.subr.bf16.mxu1 %v629_v22 }
 0x11e   :  { %1550 = vmatpush3.bf16.msra.mxu0 %v2247_v27  ;;  %1697 = vmatpush3.bf16.msra.mxu1 %v2247_v27  ;;  %v1736_v27 = vld [vmem:[%s2536_s3 + $0x20] ss:$8 sps:$4 sm:$0xff]   ;;  %v2387_v28 = vpop.permute.xlu0 %715 }
 0x11f   :  { %1551 = vmatprep.subr.bf16.mxu0 %v630_v19  ;;  %1690 = vmatprep.subr.bf16.mxu1 %v630_v19  ;;  %v2389_v2 = vpop.permute.xlu1 %720 }
 0x122   :  { %1552 = vmatpush3.bf16.msra.mxu0 %v2245_v7  ;;  %1698 = vmatpush3.bf16.msra.mxu1 %v2245_v7  ;;  %v1731_v7 = vld [vmem:[%s2536_s3 + $0x60] ss:$8 sps:$4 sm:$0xff]   ;;  %v2391_v55 = vpop.permute.xlu0 %725 }
 0x123   :  { %v2393_v3 = vpop.permute.xlu1 %730 }
 0x125   :  { %1016 = vmatmul.mubr.bf16.vlgmr.msra.gmra.mrb[32].mxu0 %v1720_v26  ;;  %1056 = vmatmul.mubr.bf16.vlgmr.msra.gmra.mrb[0].mxu1 %v1723_v57 }
 0x126   :  { %1023 = vmatprep.mubr.bf16.mxu0 %v1726_v63  ;;  %1063 = vmatprep.mubr.bf16.mxu1 %v1728_v12  ;;  %v2395_v11 = vpop.permute.xlu0 %735 }
 0x127   :  { %v2397_v24 = vpop.permute.xlu1 %740 }
 0x12a   :  { %v2399_v8 = vpop.permute.xlu0 %745 }
 0x12b   :  { %v2401_v10 = vpop.permute.xlu1 %750 }
 0x12d   :  { %1024 = vmatmul.mubr.bf16.gmra.mrb[36].mxu0 %v1730_v21  ;;  %1064 = vmatmul.mubr.bf16.gmra.mrb[4].mxu1 %v1731_v7 }
 0x12e   :  { %1031 = vmatprep.mubr.bf16.mxu0 %v1732_v23  ;;  %1071 = vmatprep.mubr.bf16.mxu1 %v1734_v25  ;;  %v2403_v13 = vpop.permute.xlu0 %755 }
 0x12f   :  { %v2405_v4 = vpop.permute.xlu1 %760 }
 0x132   :  { %v2407_v9 = vpop.permute.xlu0 %765 }
 0x133   :  { %v2409_v15 = vpop.permute.xlu1 %770 }
 0x135   :  { %1032 = vmatmul.mubr.bf16.gmra.mrb[40].mxu0 %v1736_v27  ;;  %1072 = vmatmul.mubr.bf16.gmra.mrb[8].mxu1 %v1737_v29 }
 0x136   :  { %1039 = vmatprep.mubr.bf16.mxu0 %v1738_v30  ;;  %1079 = vmatprep.mubr.bf16.mxu1 %v1740_v31  ;;  %v2411_v16 = vpop.permute.xlu0 %775 }
 0x137   :  { %v2413_v6 = vpop.permute.xlu1 %780 }
 0x13a   :  { %v2415_v48 = vpop.permute.xlu0 %785 }
 0x13b   :  { %v2417_v14 = vpop.permute.xlu1 %790 }
 0x13d   :  { %1040 = vmatmul.mubr.bf16.gmra.mrb[44].mxu0 %v1742_v33  ;;  %1080 = vmatmul.mubr.bf16.gmra.mrb[12].mxu1 %v1743_v34 }
 0x13e   :  { %1047 = vmatprep.mubr.bf16.mxu0 %v1744_v35  ;;  %1087 = vmatprep.mubr.bf16.mxu1 %v1746_v37  ;;  %v2419_v5 = vpop.permute.xlu0 %795 }
 0x13f   :  { %v2421_v17 = vpop.permute.xlu1 %800 }
 0x142   :  { %v1211_v18 = vpop.permute.xlu0 %1210 }
 0x143   :  { %v1216_v43 = vpop.permute.xlu1 %1215 }
 0x145   :  { %1048 = vmatmul.mubr.bf16.gmra.mrb[48].mxu0 %v1748_v38  ;;  %1088 = vmatmul.mubr.bf16.gmra.mrb[16].mxu1 %v1749_v39 }
 0x146   :  { %1095 = vmatprep.mubr.bf16.mxu1 %v1750_v40  ;;  %v1221_v51 = vpop.permute.xlu0 %1220 }
 0x147   :  { %v1226_v19 = vpop.permute.xlu1 %1225 }
 0x14a   :  { %v2423_v20 = vpop.permute.xlu0 %1230 }
 0x14b   :  { %v2425_v22 = vpop.permute.xlu1 %1235 }
 0x14d   :  { %1096 = vmatmul.mubr.bf16.gmra.mrb[20].mxu1 %v1752_v41 }
 0x14e   :  { %1103 = vmatprep.mubr.bf16.mxu1 %v1753_v42  ;;  %v2427_v26 = vpop.permute.xlu0 %1240 }
 0x14f   :  { %v2429_v57 = vpop.permute.xlu1 %1245 }
 0x152   :  { %v2431_v63 = vpop.permute.xlu0 %1250 }
 0x153   :  { %v2433_v12 = vpop.permute.xlu1 %1255 }
 0x155   :  { %1104 = vmatmul.mubr.bf16.gmra.mrb[24].mxu1 %v1755_v46 }
 0x156   :  { %1111 = vmatprep.mubr.bf16.mxu1 %v1756_v47  ;;  %v2439_v41 = vpop.permute.xlu0 %1260 }
 0x157   :  { %v2441_v42 = vpop.permute.xlu1 %1265 }
 0x15d   :  { %1112 = vmatmul.mubr.bf16.gmra.mrb[28].mxu1 %v1758_v49 }
 0x15e   :  { %1119 = vmatprep.mubr.bf16.mxu1 %v1759_v50 }
 0x165   :  { %1120 = vmatmul.mubr.bf16.gmra.mrb[32].mxu1 %v1761_v44 }
 0x166   :  { %1127 = vmatprep.mubr.bf16.mxu1 %v1762_v52 }
 0x16d   :  { %1128 = vmatmul.mubr.bf16.gmra.mrb[36].mxu1 %v1764_v32 }
 0x16e   :  { %1135 = vmatprep.mubr.bf16.mxu1 %v1765_v45 }
 0x175   :  { %1136 = vmatmul.mubr.bf16.gmra.mrb[40].mxu1 %v1767_v36 }
 0x1f8   :  { %v1553_v21 = vpop.f32.mrb[32].mxu0  ;;  %v1583_v7 = vpop.f32.mrb[0].mxu1 }
 0x1f9   :  { %v1554_v23 = vpop.f32.mrb[33].mxu0  ;;  %v1584_v25 = vpop.f32.mrb[1].mxu1 }
 0x1fa   :  { %v1555_v27 = vadd.f32 %v1554_v23, %v1553_v21  ;;  %v2435_v29 = vadd.f32 %v1584_v25, %v1583_v7  ;;  %v1556_v30 = vpop.f32.mrb[34].mxu0  ;;  %v1586_v31 = vpop.f32.mrb[2].mxu1 }
 0x1fb   :  { %v1557_v33 = vpop.f32.mrb[35].mxu0  ;;  %v1587_v34 = vpop.f32.mrb[3].mxu1 }
 0x1fc   :  { %v1018_v35 = vadd.f32 %v1555_v27, %v666_v53  ;;  %v1558_v37 = vadd.f32 %v1557_v33, %v1556_v30  ;;  %v2437_v38 = vadd.f32 %v1587_v34, %v1586_v31  ;;  %v2449_v34 = vpop.permute.xlu0 %1270 }
 0x1fe   :  { %v1144_v39 = vmax.f32 %v1018_v35, 0.0  ;;  %v1021_v40 = vadd.f32 %v1558_v37, %v671_v56 }
 0x200   :  { %v1145_v46 = vmax.f32 %v1021_v40, 0.0  ;;  %v1559_v47 = vpop.f32.mrb[36].mxu0  ;;  %v1589_v49 = vpop.f32.mrb[4].mxu1  ;;  %v1368_v52 = vmul.f32 %v1211_v18, %v1144_v39 }
 0x201   :  { %v1560_v50 = vpop.f32.mrb[37].mxu0  ;;  %v1590_v44 = vpop.f32.mrb[5].mxu1 }
 0x202   :  { %v1369_v32 = vmul.f32 %v1216_v43, %v1145_v46  ;;  %v1561_v45 = vadd.f32 %v1560_v50, %v1559_v47  ;;  %v2443_v36 = vadd.f32 %v1590_v44, %v1589_v49  ;;  %v1562_v53 = vpop.f32.mrb[38].mxu0  ;;  %v1592_v21 = vpop.f32.mrb[6].mxu1 }
 0x203   :  { %v1563_v7 = vpop.f32.mrb[39].mxu0  ;;  %v1593_v23 = vpop.f32.mrb[7].mxu1 }
 0x204   :  { %v1400_v25 = vadd.f32 %v1369_v32, %v1368_v52  ;;  %v1026_v56 = vadd.f32 %v1561_v45, %v2371_v0  ;;  %v1564_v27 = vadd.f32 %v1563_v7, %v1562_v53  ;;  %v2446_v30 = vadd.f32 %v1593_v23, %v1592_v21  ;;  %v2451_v18 = vpop.permute.xlu1 %1275 }
 0x206   :  { %v1146_v31 = vmax.f32 %v1026_v56, 0.0  ;;  %v1029_v33 = vadd.f32 %v1564_v27, %v2373_v58  ;;  %v2459_v56 = vpop.permute.xlu0 %1280 }
 0x208   :  { %v1370_v43 = vmul.f32 %v1221_v51, %v1146_v31  ;;  %v1147_v35 = vmax.f32 %v1029_v33, 0.0  ;;  %v1565_v37 = vpop.f32.mrb[40].mxu0  ;;  %v1595_v39 = vpop.f32.mrb[8].mxu1 }
 0x209   :  { %v1566_v40 = vpop.f32.mrb[41].mxu0  ;;  %v1596_v46 = vpop.f32.mrb[9].mxu1 }
 0x20a   :  { %v1401_v47 = vadd.f32 %v1400_v25, %v1370_v43  ;;  %v1371_v49 = vmul.f32 %v1226_v19, %v1147_v35  ;;  %v1567_v50 = vadd.f32 %v1566_v40, %v1565_v37  ;;  %v2453_v0 = vadd.f32 %v1596_v46, %v1595_v39  ;;  %v1568_v44 = vpop.f32.mrb[42].mxu0  ;;  %v1598_v52 = vpop.f32.mrb[10].mxu1 }
 0x20b   :  { %v1569_v32 = vpop.f32.mrb[43].mxu0  ;;  %v1599_v45 = vpop.f32.mrb[11].mxu1 }
 0x20c   :  { %v1402_v58 = vadd.f32 %v1401_v47, %v1371_v49  ;;  %v1034_v53 = vadd.f32 %v1567_v50, %v2375_v59  ;;  %v1570_v21 = vadd.f32 %v1569_v32, %v1568_v44  ;;  %v2456_v7 = vadd.f32 %v1599_v45, %v1598_v52  ;;  %v2461_v25 = vpop.permute.xlu1 %1285 }
 0x20e   :  { %v1148_v51 = vmax.f32 %v1034_v53, 0.0  ;;  %v1037_v23 = vadd.f32 %v1570_v21, %v2377_v54  ;;  %v2469_v53 = vpop.permute.xlu0 %1290 }
 0x210   :  { %v1372_v19 = vmul.f32 %v2423_v20, %v1148_v51  ;;  %v1149_v27 = vmax.f32 %v1037_v23, 0.0  ;;  %v1571_v31 = vpop.f32.mrb[44].mxu0  ;;  %v1601_v33 = vpop.f32.mrb[12].mxu1 }
 0x211   :  { %v1572_v43 = vpop.f32.mrb[45].mxu0  ;;  %v1602_v35 = vpop.f32.mrb[13].mxu1 }
 0x212   :  { %v1403_v37 = vadd.f32 %v1402_v58, %v1372_v19  ;;  %v1373_v59 = vmul.f32 %v2425_v22, %v1149_v27  ;;  %v1573_v39 = vadd.f32 %v1572_v43, %v1571_v31  ;;  %v2465_v40 = vadd.f32 %v1602_v35, %v1601_v33  ;;  %v1574_v46 = vpop.f32.mrb[46].mxu0  ;;  %v1604_v47 = vpop.f32.mrb[14].mxu1 }
 0x213   :  { %v1575_v54 = vpop.f32.mrb[47].mxu0  ;;  %v1605_v49 = vpop.f32.mrb[15].mxu1 }
 0x214   :  { %v1404_v50 = vadd.f32 %v1403_v37, %v1373_v59  ;;  %v1042_v44 = vadd.f32 %v1573_v39, %v2379_v1  ;;  %v1576_v52 = vadd.f32 %v1575_v54, %v1574_v46  ;;  %v1606_v20 = vadd.f32 %v1605_v49, %v1604_v47  ;;  %v2471_v58 = vpop.permute.xlu1 %1295  ;;  %v2478_v49 = vpop.permute.xlu0 %1300 }
 0x215   :  { %v1058_v39 = vadd.f32 %v2435_v29, %v2387_v28 }
 0x216   :  { %v1150_v32 = vmax.f32 %v1042_v44, 0.0  ;;  %v1045_v45 = vadd.f32 %v1576_v52, %v2381_v60 }
 0x218   :  { %v1374_v22 = vmul.f32 %v2427_v26, %v1150_v32  ;;  %v1151_v21 = vmax.f32 %v1045_v45, 0.0  ;;  %v1577_v51 = vpop.f32.mrb[48].mxu0  ;;  %v1607_v23 = vpop.f32.mrb[16].mxu1  ;;  %v1154_v32 = vmax.f32 %v1058_v39, 0.0  ;;  %v1066_v45 = vadd.f32 %v2443_v36, %v2391_v55 }
 0x219   :  { %v1578_v19 = vpop.f32.mrb[49].mxu0  ;;  %v1608_v27 = vpop.f32.mrb[17].mxu1 }
 0x21a   :  { %v1405_v31 = vadd.f32 %v1404_v50, %v1374_v22  ;;  %v1375_v33 = vmul.f32 %v2429_v57, %v1151_v21  ;;  %v1579_v1 = vadd.f32 %v1578_v19, %v1577_v51  ;;  %v1609_v43 = vadd.f32 %v1608_v27, %v1607_v23  ;;  %v1580_v35 = vpop.f32.mrb[50].mxu0  ;;  %v1610_v37 = vpop.f32.mrb[18].mxu1 }
 0x21b   :  { %v1581_v59 = vpop.f32.mrb[51].mxu0  ;;  %v1611_v60 = vpop.f32.mrb[19].mxu1  ;;  %v1061_v50 = vadd.f32 %v2437_v38, %v2389_v2  ;;  %v1069_v22 = vadd.f32 %v2446_v30, %v2393_v3  ;;  %v1074_v19 = vadd.f32 %v2453_v0, %v2395_v11  ;;  %v1378_v55 = vmul.f32 %v2439_v41, %v1154_v32 }
 0x21c   :  { %v1406_v46 = vadd.f32 %v1405_v31, %v1375_v33  ;;  %v1050_v26 = vadd.f32 %v1579_v1, %v2383_v61  ;;  %v1582_v47 = vadd.f32 %v1581_v59, %v1580_v35  ;;  %v1612_v54 = vadd.f32 %v1611_v60, %v1610_v37  ;;  %v2483_v52 = vpop.permute.xlu1 %1305  ;;  %v1311_v31 = vpop.permute.xlu0 %1310 }
 0x21d   :  { %v1155_v51 = vmax.f32 %v1061_v50, 0.0  ;;  %v1157_v35 = vmax.f32 %v1069_v22, 0.0  ;;  %v1077_v30 = vadd.f32 %v2456_v7, %v2397_v24  ;;  %v1158_v37 = vmax.f32 %v1074_v19, 0.0 }
 0x21e   :  { %v1152_v57 = vmax.f32 %v1050_v26, 0.0  ;;  %v1053_v44 = vadd.f32 %v1582_v47, %v2385_v62  ;;  %v1082_v11 = vadd.f32 %v2465_v40, %v2399_v8  ;;  %v1085_v47 = vadd.f32 %v1606_v20, %v2401_v10 }
 0x21f   :  { %v1379_v3 = vmul.f32 %v2441_v42, %v1155_v51  ;;  %v1381_v41 = vmul.f32 %v2451_v18, %v1157_v35  ;;  %v1159_v26 = vmax.f32 %v1077_v30, 0.0  ;;  %v1382_v7 = vmul.f32 %v2459_v56, %v1158_v37 }
 0x220   :  { %v1376_v28 = vmul.f32 %v2431_v63, %v1152_v57  ;;  %v1153_v29 = vmax.f32 %v1053_v44, 0.0  ;;  %v1613_v61 = vpop.f32.mrb[20].mxu1  ;;  %v1156_v63 = vmax.f32 %v1066_v45, 0.0  ;;  %v1316_v1 = vpop.permute.xlu1 %1315  ;;  %v1090_v32 = vadd.f32 %v1609_v43, %v2403_v13 }
 0x221   :  { %v1614_v21 = vpop.f32.mrb[21].mxu1  ;;  %v1383_v45 = vmul.f32 %v2461_v25, %v1159_v26  ;;  %v1161_v18 = vmax.f32 %v1085_v47, 0.0 }
 0x222   :  { %v1407_v23 = vadd.f32 %v1406_v46, %v1376_v28  ;;  %v1377_v2 = vmul.f32 %v2433_v12, %v1153_v29  ;;  %v1615_v38 = vadd.f32 %v1614_v21, %v1613_v61  ;;  %v1616_v62 = vpop.f32.mrb[22].mxu1  ;;  %v1380_v59 = vmul.f32 %v2449_v34, %v1156_v63  ;;  %v1321_v46 = vpop.permute.xlu0 %1320 }
 0x223   :  { %v1617_v27 = vpop.f32.mrb[23].mxu1  ;;  %v1160_v34 = vmax.f32 %v1082_v11, 0.0  ;;  %v1093_v28 = vadd.f32 %v1612_v54, %v2405_v4  ;;  %v1162_v20 = vmax.f32 %v1090_v32, 0.0  ;;  %v1385_v43 = vmul.f32 %v2471_v58, %v1161_v18 }
 0x224   :  { %v1408_v36 = vadd.f32 %v1407_v23, %v1377_v2  ;;  %v1618_v33 = vadd.f32 %v1617_v27, %v1616_v62  ;;  %v1326_v24 = vpop.permute.xlu1 %1325  ;;  %v1098_v21 = vadd.f32 %v1615_v38, %v2407_v9 }
 0x225   :  { %v1384_v10 = vmul.f32 %v2469_v53, %v1160_v34  ;;  %v1163_v2 = vmax.f32 %v1093_v28, 0.0  ;;  %v1386_v53 = vmul.f32 %v2478_v49, %v1162_v20 }
 0x226   :  { %v1409_v12 = vadd.f32 %v1408_v36, %v1378_v55  ;;  %v1331_v61 = vpop.permute.xlu0 %1330  ;;  %v1101_v23 = vadd.f32 %v1618_v33, %v2409_v15  ;;  %v1164_v55 = vmax.f32 %v1098_v21, 0.0 }
 0x227   :  { %v1387_v36 = vmul.f32 %v2483_v52, %v1163_v2 }
 0x228   :  { %v1410_v0 = vadd.f32 %v1409_v12, %v1379_v3  ;;  %v1619_v60 = vpop.f32.mrb[24].mxu1  ;;  %v1336_v51 = vpop.permute.xlu1 %1335  ;;  %v1165_v9 = vmax.f32 %v1101_v23, 0.0  ;;  %v1388_v30 = vmul.f32 %v1311_v31, %v1164_v55 }
 0x229   :  { %v1620_v39 = vpop.f32.mrb[25].mxu1 }
 0x22a   :  { %v1411_v42 = vadd.f32 %v1410_v0, %v1380_v59  ;;  %v1621_v50 = vadd.f32 %v1620_v39, %v1619_v60  ;;  %v1622_v57 = vpop.f32.mrb[26].mxu1  ;;  %v806_v38 = vpop.permute.xlu0 %805  ;;  %v1389_v37 = vmul.f32 %v1316_v1, %v1165_v9 }
 0x22b   :  { %v1623_v44 = vpop.f32.mrb[27].mxu1 }
 0x22c   :  { %v1412_v8 = vadd.f32 %v1411_v42, %v1381_v41  ;;  %v1624_v40 = vadd.f32 %v1623_v44, %v1622_v57  ;;  %v1106_v4 = vadd.f32 %v1621_v50, %v2411_v16  ;;  %v1341_v58 = vpop.permute.xlu1 %1340 }
 0x22e   :  { %v1413_v29 = vadd.f32 %v1412_v8, %v1382_v7  ;;  %v1109_v33 = vadd.f32 %v1624_v40, %v2413_v6  ;;  %v1166_v35 = vmax.f32 %v1106_v4, 0.0  ;;  %v811_v26 = vpop.permute.xlu0 %810 }
 0x230   :  { %v1414_v22 = vadd.f32 %v1413_v29, %v1383_v45  ;;  %v1625_v56 = vpop.f32.mrb[28].mxu1  ;;  %v1167_v11 = vmax.f32 %v1109_v33, 0.0  ;;  %v1390_v39 = vmul.f32 %v1321_v46, %v1166_v35  ;;  %v1346_v31 = vpop.permute.xlu1 %1345 }
 0x231   :  { %v1626_v13 = vpop.f32.mrb[29].mxu1 }
 0x232   :  { %v1415_v25 = vadd.f32 %v1414_v22, %v1384_v10  ;;  %v1627_v62 = vadd.f32 %v1626_v13, %v1625_v56  ;;  %v1628_v19 = vpop.f32.mrb[30].mxu1  ;;  %v816_v40 = vpop.permute.xlu0 %815 }
 0x233   :  { %v1629_v54 = vpop.f32.mrb[31].mxu1 }
 0x234   :  { %v1416_v27 = vadd.f32 %v1415_v25, %v1385_v43  ;;  %v1630_v63 = vadd.f32 %v1629_v54, %v1628_v19  ;;  %v1114_v12 = vadd.f32 %v1627_v62, %v2415_v48  ;;  %v1391_v48 = vmul.f32 %v1326_v24, %v1167_v11  ;;  %v1351_v10 = vpop.permute.xlu1 %1350 }
 0x236   :  { %v1417_v15 = vadd.f32 %v1416_v27, %v1386_v53  ;;  %v1117_v0 = vadd.f32 %v1630_v63, %v2417_v14  ;;  %v1168_v6 = vmax.f32 %v1114_v12, 0.0 }
 0x238   :  { %v1418_v3 = vadd.f32 %v1417_v15, %v1387_v36  ;;  %v1631_v16 = vpop.f32.mrb[32].mxu1  ;;  %v1169_v7 = vmax.f32 %v1117_v0, 0.0  ;;  %v1392_v34 = vmul.f32 %v1331_v61, %v1168_v6  ;;  %v821_v61 = vpop.permute.xlu0 %820 }
 0x239   :  { %v1632_v59 = vpop.f32.mrb[33].mxu1  ;;  %v1356_v19 = vpop.permute.xlu1 %1355 }
 0x23a   :  { %v1419_v49 = vadd.f32 %v1418_v3, %v1388_v30  ;;  %v1633_v60 = vadd.f32 %v1632_v59, %v1631_v16  ;;  %v1634_v41 = vpop.f32.mrb[34].mxu1  ;;  %v1393_v45 = vmul.f32 %v1336_v51, %v1169_v7 }
 0x23b   :  { %v1635_v52 = vpop.f32.mrb[35].mxu1 }
 0x23c   :  { %v1420_v47 = vadd.f32 %v1419_v49, %v1389_v37  ;;  %v1122_v42 = vadd.f32 %v1633_v60, %v2419_v5  ;;  %v1636_v50 = vadd.f32 %v1635_v52, %v1634_v41  ;;  %v1361_v33 = vpop.permute.xlu0 %1360  ;;  %v1438_v60 = vstv %s2539_s6 }
 0x23d   :  { %v1366_v3 = vpop.permute.xlu1 %1365 }
 0x23e   :  { %v1421_v57 = vadd.f32 %v1420_v47, %v1390_v39  ;;  %v1125_v1 = vadd.f32 %v1636_v50, %v2421_v17  ;;  %v1170_v32 = vmax.f32 %v1122_v42, 0.0 }
 0x240   :  { %v1422_v44 = vadd.f32 %v1421_v57, %v1391_v48  ;;  %v1637_v14 = vpop.f32.mrb[36].mxu1  ;;  %v1171_v18 = vmax.f32 %v1125_v1, 0.0  ;;  %v1394_v22 = vmul.f32 %v1341_v58, %v1170_v32 }
 0x241   :  { %v1638_v8 = vpop.f32.mrb[37].mxu1 }
 0x242   :  { %v1423_v46 = vadd.f32 %v1422_v44, %v1392_v34  ;;  %v1639_v28 = vadd.f32 %v1638_v8, %v1637_v14  ;;  %v1640_v29 = vpop.f32.mrb[38].mxu1  ;;  %v1395_v23 = vmul.f32 %v1346_v31, %v1171_v18 }
 0x243   :  { %v1641_v5 = vpop.f32.mrb[39].mxu1 }
 0x244   :  { %v1424_v20 = vadd.f32 %v1423_v46, %v1393_v45  ;;  %v1130_v21 = vadd.f32 %v1639_v28, %v806_v38  ;;  %v1642_v24 = vadd.f32 %v1641_v5, %v1640_v29 }
 0x246   :  { %v1425_v56 = vadd.f32 %v1424_v20, %v1394_v22  ;;  %v1172_v17 = vmax.f32 %v1130_v21, 0.0  ;;  %v1133_v13 = vadd.f32 %v1642_v24, %v811_v26 }
 0x248   :  { %v1426_v43 = vadd.f32 %v1425_v56, %v1395_v23  ;;  %v1396_v2 = vmul.f32 %v1351_v10, %v1172_v17  ;;  %v1173_v25 = vmax.f32 %v1133_v13, 0.0  ;;  %v1643_v62 = vpop.f32.mrb[40].mxu1 }
 0x249   :  { %v1644_v51 = vpop.f32.mrb[41].mxu1 }
 0x24a   :  { %v1427_v4 = vadd.f32 %v1426_v43, %v1396_v2  ;;  %v1397_v54 = vmul.f32 %v1356_v19, %v1173_v25  ;;  %v1645_v53 = vadd.f32 %v1644_v51, %v1643_v62  ;;  %v1646_v27 = vpop.f32.mrb[42].mxu1 }
 0x24b   :  { %v1647_v55 = vpop.f32.mrb[43].mxu1 }
 0x24c   :  { %v1428_v63 = vadd.f32 %v1427_v4, %v1397_v54  ;;  %v1138_v9 = vadd.f32 %v1645_v53, %v816_v40  ;;  %v1648_v38 = vadd.f32 %v1647_v55, %v1646_v27 }
 0x24e   :  { %v1174_v36 = vmax.f32 %v1138_v9, 0.0  ;;  %v1141_v15 = vadd.f32 %v1648_v38, %v821_v61 }
 0x250   :  { %v1398_v58 = vmul.f32 %v1361_v33, %v1174_v36  ;;  %v1175_v35 = vmax.f32 %v1141_v15, 0.0 }
 0x252   :  { %v1429_v30 = vadd.f32 %v1428_v63, %v1398_v58  ;;  %v1399_v12 = vmul.f32 %v1366_v3, %v1175_v35 }
 0x254   :  { %v1430_v16 = vadd.f32 %v1429_v30, %v1399_v12 }
 0x256   :  { %v1431_v37 = vrot.slane %v1430_v16, 4 }
 0x258   :  { %v1432_v59 = vadd.f32 %v1431_v37, %v1430_v16 }
 0x25a   :  { %v1433_v49 = vrot.slane %v1432_v59, 2 }
 0x25c   :  { %v1434_v11 = vadd.f32 %v1433_v49, %v1432_v59 }
 0x25e   :  { %v1435_v0 = vrot.slane %v1434_v11, 1 }
 0x260   :  { %v1436_v41 = vadd.f32 %v1435_v0, %v1434_v11 }
 0x262   :  { %v1439_v39 = vadd.f32 %v1438_v60, %v1436_v41 }
 0x264   :  { %1440 = vst [vmem:[#allocation3] sm:$0x1] %v1439_v39 }
 0x265   :  { %1779 = shalt.err (!%p1776_p4)
}
 0x266   :  { %s1780_s12 = scalar_lea.hbm %s2540_s7, 16 }
 0x267   :  { %p1781_p5 = scmp.ne.s32.totalorder %s2540_s7, %s1780_s12  ;;  %p1784_p6 = scmp.lt.u32.totalorder %s1780_s12, %s2540_s7 }
 0x269   :  { %p1786_p7 = pnand %p1784_p6, %p1781_p5 }
 0x26b   :  { %1789 = shalt.err (!%p1786_p7)
}
 0x26c   :  { %1450 = dma.vmem_to_hbm [thread:$0]  %s1448_s1, 16, %s2540_s7, [#allocation4]  }
 0x26d   :  { %1790 = dma.done.wait [#allocation4], 16  }
 0x26e   :  { %1791 = vsyncadd [#allocation4], 4294967280 }
 0x26f   :  { %1454 = vsyncpa [#allocation4], 1 }

</bundles_post_ra>
